<compile_context>
chip_gen: v7x
topology: tpu7x:2x2x1
jax: 0.10.0
libtpu: 0.0.40
codegen_flags: <defaults>
</compile_context>

<pallas_src>
import functools

import jax
import jax.numpy as jnp
from jax import lax
from jax.experimental import pallas as pl
from jax.experimental.pallas import tpu as pltpu


def _head_kernel(cls_ref, wp_ref, bp_ref, wc_ref, bc_ref, logits_ref, *,
                 tanh_in_bf16):
    """Pooler (dense + tanh) + width-1 classifier for one TILE_N tile of rows.

    cls_ref    : (TILE_N, H) bf16  -- CLS hidden states for this tile
    wp_ref     : (H, H)      bf16  -- pooler dense weight (VMEM-resident)
    bp_ref     : (1, H)      f32   -- pooler dense bias   (VMEM-resident)
    wc_ref     : (1, H)      bf16  -- classifier weight   (VMEM-resident)
    bc_ref     : (1,)        f32   -- classifier bias     (SMEM scalar)
    logits_ref : (1, TILE_N) f32   -- lane-dense logits row for this tile
    """
    # BERT pooler: tanh(CLS @ W_pool + b_pool).  bf16 MXU operands, f32 acc.
    pre = (jnp.dot(cls_ref[...], wp_ref[...],
                   preferred_element_type=jnp.float32)
           + bp_ref[...])                                      # (TILE_N, H) f32
    if tanh_in_bf16:
        # v6e/v7x option: packed-bf16 EUP tanh (halves the only EUP work).
        pooled = jnp.tanh(pre.astype(jnp.bfloat16))            # (TILE_N, H) bf16
    else:
        # v5e / reference-exact path: tanh in f32, cast only for the MXU.
        pooled = jnp.tanh(pre).astype(jnp.bfloat16)            # (TILE_N, H) bf16

    # Classifier (num_labels == 1): contract H on the MXU with w_cls as the
    # (1, H) LHS so the result is already the lane-dense (1, TILE_N) row --
    # no (TILE_N, 1) column, no transpose, no eye-mask trick.
    row = lax.dot_general(
        wc_ref[...], pooled,
        dimension_numbers=(((1,), (1,)), ((), ())),
        preferred_element_type=jnp.float32)                    # (1, TILE_N) f32
    logits_ref[...] = row + bc_ref[0]


def cross_encoder_forward(hidden, params, *, batch_size, group_size,
                          tile_n=128, tanh_in_bf16=False):
    """CrossEncoder.forward (training branch), starting from final hidden states.

    hidden: [N, S, H] final transformer hidden states, N = batch * group.
    Returns (loss, logits[N, 1]) -- matching SequenceClassifierOutput(loss, logits).
    """
    N, S, H = hidden.shape
    assert N == batch_size * group_size
    assert H % 128 == 0, "hidden size must be lane-aligned"
    assert tile_n % 128 == 0, (
        "TILE_N must be a multiple of 128 (MXU M dim / lane-dense logits row);"
        " use 128 on v5e, 256-512 on v6e/v7x")

    n_pad = pl.cdiv(N, tile_n) * tile_n
    num_tiles = n_pad // tile_n
    # TODO(synk): on v7x pad num_tiles to an even count so both TensorCores
    #             get equal work when the 'parallel' grid axis is sharded.

    # CLS pooling in the wrapper: only the [N, H] CLS rows are read out of the
    # [N, S, H] hidden tensor; slice + bf16 cast + zero-pad fuse into one XLA
    # pass (padded rows are zeros -> finite garbage logits, dropped below).
    # TODO(synk): a squeezed BlockSpec over `hidden` would avoid even this
    #             N*H bf16 materialization; kept in-wrapper for portability.
    cls_b = jnp.pad(hidden[:, 0, :].astype(jnp.bfloat16),
                    ((0, n_pad - N), (0, 0)))
    wp_b = params["w_pool"].astype(jnp.bfloat16)
    wc_b = params["w_cls"].reshape(1, H).astype(jnp.bfloat16)
    b_pool = params["b_pool"].reshape(1, H).astype(jnp.float32)
    b_cls = params["b_cls"].reshape(1).astype(jnp.float32)     # SMEM scalar

    kernel = functools.partial(_head_kernel, tanh_in_bf16=tanh_in_bf16)
    logits_t = pl.pallas_call(
        kernel,
        out_shape=jax.ShapeDtypeStruct((num_tiles, tile_n), jnp.float32),
        grid_spec=pl.GridSpec(
            grid=(num_tiles,),
            in_specs=[
                pl.BlockSpec((tile_n, H), lambda i: (i, 0)),   # CLS tile (bf16)
                pl.BlockSpec((H, H), lambda i: (0, 0)),        # W_pool, resident
                pl.BlockSpec((1, H), lambda i: (0, 0)),        # b_pool, resident
                pl.BlockSpec((1, H), lambda i: (0, 0)),        # w_cls,  resident
                pl.BlockSpec(memory_space=pltpu.MemorySpace.SMEM),  # b_cls
            ],
            out_specs=pl.BlockSpec((1, tile_n), lambda i: (i, 0)),  # lane-dense
        ),
        compiler_params=pltpu.CompilerParams(
            dimension_semantics=("parallel",),   # shard N tiles across TCs
            vmem_limit_bytes=32 * 1024 * 1024,
        ),
        cost_estimate=pl.CostEstimate(
            flops=2 * n_pad * H * H + 2 * n_pad * H,
            transcendentals=n_pad * H,
            bytes_accessed=(n_pad * H + H * H + 2 * H) * 2 + n_pad * 4 + 4),
    )(cls_b, wp_b, b_pool, wc_b, b_cls)

    logits = logits_t.reshape(-1)[:N].reshape(N, 1)    # matches HF logits [N, 1]

    # CrossEncoder training loss (use_my_modified_loss_model == '0' branch):
    # CrossEntropyLoss(scores.view(B, G), zeros) == mean_b(logsumexp_b - score_b[0]).
    # Computed in XLA on the kernel's already-in-HBM logits (free, per review).
    scores = logits.reshape(batch_size, group_size)
    loss = jnp.mean(jax.nn.logsumexp(scores, axis=-1) - scores[:, 0])
    return loss, logits


if __name__ == "__main__":
    # per_device_train_batch_size=4, train_group_size=8 -> N = 32 sequences;
    # seq=8, hidden=128 (lane-aligned).  tile_n=128 -> one MXU-aligned tile.
    B, G, S, H = 4, 8, 8, 128
    N = B * G

    key = jax.random.PRNGKey(0)
    k_hid, k_wp, k_bp, k_wc, k_bc = jax.random.split(key, 5)
    hidden = jax.random.normal(k_hid, (N, S, H), dtype=jnp.float32)
    params = {
        "w_pool": jax.random.normal(k_wp, (H, H), jnp.float32) * 0.05,
        "b_pool": jax.random.normal(k_bp, (1, H), jnp.float32) * 0.01,
        "w_cls": jax.random.normal(k_wc, (1, H), jnp.float32) * 0.05,
        "b_cls": jax.random.normal(k_bc, (1, 1), jnp.float32) * 0.01,
    }

    fwd = jax.jit(functools.partial(
        cross_encoder_forward, batch_size=B, group_size=G, tile_n=128))
    loss, logits = fwd(hidden, params)
    jax.block_until_ready((loss, logits))

    # Pure-JAX reference (same bf16 quantization of the MXU operands).
    cls_q = hidden[:, 0, :].astype(jnp.bfloat16)
    wp_q = params["w_pool"].astype(jnp.bfloat16)
    pooled = jnp.tanh(
        jnp.dot(cls_q, wp_q, preferred_element_type=jnp.float32)
        + params["b_pool"])
    wc_q = params["w_cls"].astype(jnp.bfloat16)
    ref_logits = (jnp.dot(pooled.astype(jnp.bfloat16), wc_q.T,
                          preferred_element_type=jnp.float32)
                  + params["b_cls"])
    ref_scores = ref_logits.reshape(B, G)
    ref_loss = jnp.mean(jax.nn.logsumexp(ref_scores, axis=-1) - ref_scores[:, 0])

    assert logits.shape == (N, 1)
    assert jnp.allclose(logits, ref_logits, atol=5e-3, rtol=1e-3), (
        float(jnp.max(jnp.abs(logits - ref_logits))))
    assert jnp.allclose(loss, ref_loss, atol=5e-3, rtol=1e-3), (
        float(loss), float(ref_loss))

    print("KERNEL_OK")
</pallas_src>

<mosaic_0001>
module attributes {stable_mosaic.version = 11 : i64} {
  func.func @_head_kernel(%arg0: i32, %arg1: memref<128x128xbf16, #tpu.memory_space<vmem>>, %arg2: memref<128x128xbf16, #tpu.memory_space<vmem>>, %arg3: memref<1x128xf32, #tpu.memory_space<vmem>>, %arg4: memref<1x128xbf16, #tpu.memory_space<vmem>>, %arg5: memref<1xf32, #tpu.memory_space<smem>>, %arg6: memref<1x128xf32, #tpu.memory_space<vmem>>) attributes {dimension_semantics = [#tpu.dimension_semantics<parallel>], iteration_bounds = array<i64: 1>, scalar_prefetch = 0 : i64, scratch_operands = 0 : i64, tpu.core_type = #tpu.core_type<tc>, window_params = [{transform_indices = @transform_0, window_bounds = array<i64: 128, 128>}, {pipeline_mode = #tpu.pipeline_mode<synchronous>, transform_indices = @transform_1, window_bounds = array<i64: 128, 128>}, {pipeline_mode = #tpu.pipeline_mode<synchronous>, transform_indices = @transform_2, window_bounds = array<i64: 1, 128>}, {pipeline_mode = #tpu.pipeline_mode<synchronous>, transform_indices = @transform_3, window_bounds = array<i64: 1, 128>}, {transform_indices = @transform_4, window_bounds = array<i64: 1>}, {transform_indices = @transform_5, window_bounds = array<i64: 1, 128>}]} {
    %c0 = arith.constant 0 : index
    %c0_0 = arith.constant 0 : index
    %0 = vector.load %arg1[%c0, %c0_0] : memref<128x128xbf16, #tpu.memory_space<vmem>>, vector<128x128xbf16>
    %c0_1 = arith.constant 0 : index
    %c0_2 = arith.constant 0 : index
    %1 = vector.load %arg2[%c0_1, %c0_2] : memref<128x128xbf16, #tpu.memory_space<vmem>>, vector<128x128xbf16>
    %cst = arith.constant dense<0.000000e+00> : vector<128x128xf32>
    %2 = tpu.matmul %0, %1, %cst {dimension_numbers = #tpu.dot_dimension_numbers<[1], [0], [0], [1], [0, 0, 1, 1], [], []>} : vector<128x128xbf16>, vector<128x128xbf16>, vector<128x128xf32> -> vector<128x128xf32>
    %c0_3 = arith.constant 0 : index
    %c0_4 = arith.constant 0 : index
    %3 = vector.load %arg3[%c0_3, %c0_4] : memref<1x128xf32, #tpu.memory_space<vmem>>, vector<1x128xf32>
    %4 = vector.broadcast %3 : vector<1x128xf32> to vector<128x128xf32>
    %5 = arith.addf %2, %4 : vector<128x128xf32>
    %6 = math.tanh %5 : vector<128x128xf32>
    %7 = arith.truncf %6 : vector<128x128xf32> to vector<128x128xbf16>
    %c0_5 = arith.constant 0 : index
    %c0_6 = arith.constant 0 : index
    %8 = vector.load %arg4[%c0_5, %c0_6] : memref<1x128xbf16, #tpu.memory_space<vmem>>, vector<1x128xbf16>
    %cst_7 = arith.constant dense<0.000000e+00> : vector<1x128xf32>
    %9 = tpu.matmul %8, %7, %cst_7 {dimension_numbers = #tpu.dot_dimension_numbers<[1], [1], [0], [0], [0, 0, 1, 0], [], []>} : vector<1x128xbf16>, vector<128x128xbf16>, vector<1x128xf32> -> vector<1x128xf32>
    %c0_8 = arith.constant 0 : index
    %10 = memref.load %arg5[%c0_8] : memref<1xf32, #tpu.memory_space<smem>>
    %11 = vector.broadcast %10 : f32 to vector<1x128xf32>
    %12 = arith.addf %9, %11 : vector<1x128xf32>
    %c0_9 = arith.constant 0 : index
    %c0_10 = arith.constant 0 : index
    %13 = vector.load %arg6[%c0_9, %c0_10] : memref<1x128xf32, #tpu.memory_space<vmem>>, vector<1x128xf32>
    tpu.vector_store %arg6[%c0_9, %c0_10], %12 {strides = array<i32>} : memref<1x128xf32, #tpu.memory_space<vmem>>, vector<1x128xf32>,
    return
  }
  func.func @transform_0(%arg0: i32) -> (i32, i32) {
    %c0_i32 = arith.constant 0 : i32
    %c0_i32_0 = arith.constant 0 : i32
    return %arg0, %c0_i32 : i32, i32
  }
  func.func @transform_1(%arg0: i32) -> (i32, i32) {
    %c0_i32 = arith.constant 0 : i32
    %c0_i32_0 = arith.constant 0 : i32
    %c0_i32_1 = arith.constant 0 : i32
    return %c0_i32, %c0_i32_0 : i32, i32
  }
  func.func @transform_2(%arg0: i32) -> (i32, i32) {
    %c0_i32 = arith.constant 0 : i32
    %c0_i32_0 = arith.constant 0 : i32
    %c0_i32_1 = arith.constant 0 : i32
    return %c0_i32, %c0_i32_0 : i32, i32
  }
  func.func @transform_3(%arg0: i32) -> (i32, i32) {
    %c0_i32 = arith.constant 0 : i32
    %c0_i32_0 = arith.constant 0 : i32
    %c0_i32_1 = arith.constant 0 : i32
    return %c0_i32, %c0_i32_0 : i32, i32
  }
  func.func @transform_4(%arg0: i32) -> i32 {
    %c0_i32 = arith.constant 0 : i32
    %c0_i32_0 = arith.constant 0 : i32
    return %c0_i32 : i32
  }
  func.func @transform_5(%arg0: i32) -> (i32, i32) {
    %c0_i32 = arith.constant 0 : i32
    %c0_i32_0 = arith.constant 0 : i32
    return %arg0, %c0_i32 : i32, i32
  }
}

</mosaic_0001>

<bundles_post_ra>
// kernel: cross_encoder_forward.1
= control target key start
LH: loop header
LB: loop body
LE: loop exit
PB: predicated region body
PF: predicated region fallthrough
CT: control target
= control target key end

     0   :  { %v470_v16 = vmov 0.0   ;;  %vm471_vm0 = vmmov 0   ;;  %s571_s1 = inlined_call_operand.vmem [shape: bf16[128,128], index: 1, kind: input, shape index: {}]   ;;  %s572_s0 = inlined_call_operand.vmem [shape: bf16[128,128], index: 0, kind: input, shape index: {}]   ;;  %s573_s2 = inlined_call_operand.vmem [shape: f32[1,128], index: 2, kind: input, shape index: {}]   ;;  %s574_s3 = inlined_call_operand.vmem [shape: bf16[1,128], index: 3, kind: input, shape index: {}]   ;;  %s575_s4 = inlined_call_operand.<no memory space> [shape: f32[1], index: 4, kind: input, shape index: {}]   ;;  %s576_s5 = inlined_call_operand.vmem [shape: f32[1,128], index: 5, kind: output, shape index: {}]  }
   0x1   :  { %v422_v0 = vld [vmem:[%s571_s1] sm:$0xff]   ;;  %v423_v1 = vld [vmem:[%s571_s1 + $0x8] sm:$0xff]   ;;  %v424_v2 = vld [vmem:[%s571_s1 + $0x10] sm:$0xff]   ;;  %400 = vmatprep.subr.bf16.mxu1 %v470_v16  ;;  %416 = vmatprep.mubr.msk.bf16.mxu1 %vm471_vm0, %v470_v16 }
   0x2   :  { %368 = vmatprep.subr.bf16.mxu0 %v422_v0  ;;  %v425_v3 = vld [vmem:[%s571_s1 + $0x18] sm:$0xff]   ;;  %v430_v4 = vld [vmem:[%s572_s0] sm:$0xff]   ;;  %v427_v6 = vld [vmem:[%s571_s1 + $0x28] sm:$0xff]  }
   0x3   :  { %369 = vmatpush3.bf16.msra.mxu0 %v422_v0  ;;  %384 = vmatprep.mubr.bf16.mxu0 %v430_v4  ;;  %v426_v5 = vld [vmem:[%s571_s1 + $0x20] sm:$0xff]   ;;  %v428_v7 = vld [vmem:[%s571_s1 + $0x30] sm:$0xff]   ;;  %v429_v8 = vld [vmem:[%s571_s1 + $0x38] sm:$0xff]  }
   0x4   :  { %370 = vmatprep.subr.bf16.mxu0 %v423_v1  ;;  %v431_v9 = vld [vmem:[%s572_s0 + $0x8] sm:$0xff]   ;;  %v432_v10 = vld [vmem:[%s572_s0 + $0x10] sm:$0xff]   ;;  %v433_v11 = vld [vmem:[%s572_s0 + $0x18] sm:$0xff]  }
   0x5   :  { %v434_v12 = vld [vmem:[%s572_s0 + $0x20] sm:$0xff]   ;;  %v435_v13 = vld [vmem:[%s572_s0 + $0x28] sm:$0xff]   ;;  %v436_v14 = vld [vmem:[%s572_s0 + $0x30] sm:$0xff]  }
   0x6   :  { %v437_v15 = vld [vmem:[%s572_s0 + $0x38] sm:$0xff]   ;;  %v326_v17 = vld [vmem:[%s573_s2] ss:$0 sm:$0xff] }
   0x7   :  { %371 = vmatpush3.bf16.msra.mxu0 %v423_v1 }
   0x8   :  { %372 = vmatprep.subr.bf16.mxu0 %v424_v2 }
   0xb   :  { %373 = vmatpush3.bf16.msra.mxu0 %v424_v2 }
   0xc   :  { %374 = vmatprep.subr.bf16.mxu0 %v425_v3 }
   0xf   :  { %375 = vmatpush3.bf16.msra.mxu0 %v425_v3 }
  0x10   :  { %376 = vmatprep.subr.bf16.mxu0 %v426_v5 }
  0x13   :  { %377 = vmatpush3.bf16.msra.mxu0 %v426_v5 }
  0x14   :  { %378 = vmatprep.subr.bf16.mxu0 %v427_v6 }
  0x17   :  { %379 = vmatpush3.bf16.msra.mxu0 %v427_v6 }
  0x18   :  { %380 = vmatprep.subr.bf16.mxu0 %v428_v7 }
  0x1b   :  { %381 = vmatpush3.bf16.msra.mxu0 %v428_v7 }
  0x1c   :  { %382 = vmatprep.subr.bf16.mxu0 %v429_v8 }
  0x1f   :  { %383 = vmatpush3.bf16.msra.mxu0 %v429_v8 }
  0x22   :  { %385 = vmatmul.mubr.bf16.vlgmr.msra.gmra.mrb[0].mxu0 %v431_v9 }
  0x23   :  { %388 = vmatprep.mubr.bf16.mxu0 %v432_v10  ;;  %v278_v10 = vld [vmem:[%s574_s3] sm:$0x1] }
  0x2a   :  { %389 = vmatmul.mubr.bf16.gmra.mrb[4].mxu0 %v433_v11  ;;  %v280_v11 = vstv %s575_s4 }
  0x2b   :  { %392 = vmatprep.mubr.bf16.mxu0 %v434_v12 }
  0x32   :  { %393 = vmatmul.mubr.bf16.gmra.mrb[8].mxu0 %v435_v13 }
  0x33   :  { %396 = vmatprep.mubr.bf16.mxu0 %v436_v14 }
  0x3a   :  { %397 = vmatmul.mubr.bf16.gmra.mrb[12].mxu0 %v437_v15 }
  0xf5   :  { %v386_v18 = vpop.f32.mrb[0].mxu0 }
  0xf6   :  { %v200_v19 = vadd.f32 %v386_v18, %v326_v17  ;;  %v191_v20 = vpop.f32.mrb[1].mxu0 }
  0xf7   :  { %v192_v21 = vadd.f32 %v326_v17, %v191_v20  ;;  %v387_v22 = vpop.f32.mrb[2].mxu0 }
  0xf8   :  { %438 = vtanh.f32 %v200_v19  ;;  %v203_v23 = vadd.f32 %v387_v22, %v326_v17  ;;  %v194_v24 = vpop.f32.mrb[3].mxu0 }
  0xf9   :  { %440 = vtanh.f32 %v192_v21  ;;  %v195_v25 = vadd.f32 %v326_v17, %v194_v24 }
  0xfa   :  { %442 = vtanh.f32 %v203_v23 }
  0xfb   :  { %444 = vtanh.f32 %v195_v25 }
  0xfd   :  { %v390_v26 = vpop.f32.mrb[4].mxu0 }
  0xfe   :  { %v216_v27 = vadd.f32 %v390_v26, %v326_v17  ;;  %v207_v28 = vpop.f32.mrb[5].mxu0 }
  0xff   :  { %v208_v29 = vadd.f32 %v326_v17, %v207_v28  ;;  %v391_v30 = vpop.f32.mrb[6].mxu0 }
 0x100   :  { %446 = vtanh.f32 %v216_v27  ;;  %v219_v31 = vadd.f32 %v391_v30, %v326_v17  ;;  %v210_v32 = vpop.f32.mrb[7].mxu0 }
 0x101   :  { %448 = vtanh.f32 %v208_v29  ;;  %v211_v33 = vadd.f32 %v326_v17, %v210_v32 }
 0x102   :  { %v439_v34 = vpop.eup %438  ;;  %450 = vtanh.f32 %v219_v31 }
 0x103   :  { %v441_v35 = vpop.eup %440  ;;  %452 = vtanh.f32 %v211_v33 }
 0x104   :  { %v443_v36 = vpop.eup %442 }
 0x105   :  { %v445_v37 = vpop.eup %444  ;;  %v271_v38 = vpack.c.bf16 %v443_v36, %v439_v34  ;;  %v394_v39 = vpop.f32.mrb[8].mxu0 }
 0x106   :  { %v270_v40 = vpack.c.bf16 %v445_v37, %v441_v35  ;;  %v232_v41 = vadd.f32 %v394_v39, %v326_v17  ;;  %v223_v42 = vpop.f32.mrb[9].mxu0 }
 0x107   :  { %v224_v43 = vadd.f32 %v326_v17, %v223_v42  ;;  %v395_v44 = vpop.f32.mrb[10].mxu0 }
 0x108   :  { %401 = vmatpush3.bf16.xpose.msra.mxu1 %v270_v40  ;;  %454 = vtanh.f32 %v232_v41  ;;  %v235_v45 = vadd.f32 %v395_v44, %v326_v17  ;;  %v226_v46 = vpop.f32.mrb[11].mxu0 }
 0x109   :  { %402 = vmatprep.subr.bf16.mxu1 %v470_v16  ;;  %456 = vtanh.f32 %v224_v43  ;;  %v227_v47 = vadd.f32 %v326_v17, %v226_v46 }
 0x10a   :  { %v447_v48 = vpop.eup %446  ;;  %458 = vtanh.f32 %v235_v45 }
 0x10b   :  { %v449_v49 = vpop.eup %448  ;;  %460 = vtanh.f32 %v227_v47 }
 0x10c   :  { %v451_v50 = vpop.eup %450 }
 0x10d   :  { %v453_v51 = vpop.eup %452  ;;  %v273_v52 = vpack.c.bf16 %v451_v50, %v447_v48  ;;  %v398_v53 = vpop.f32.mrb[12].mxu0 }
 0x10e   :  { %v272_v54 = vpack.c.bf16 %v453_v51, %v449_v49  ;;  %v248_v55 = vadd.f32 %v398_v53, %v326_v17  ;;  %v239_v56 = vpop.f32.mrb[13].mxu0 }
 0x10f   :  { %v240_v57 = vadd.f32 %v326_v17, %v239_v56  ;;  %v399_v58 = vpop.f32.mrb[14].mxu0 }
 0x110   :  { %403 = vmatpush3.bf16.xpose.msra.mxu1 %v271_v38  ;;  %462 = vtanh.f32 %v248_v55  ;;  %v251_v59 = vadd.f32 %v399_v58, %v326_v17  ;;  %v242_v60 = vpop.f32.mrb[15].mxu0 }
 0x111   :  { %404 = vmatprep.subr.bf16.mxu1 %v470_v16  ;;  %464 = vtanh.f32 %v240_v57  ;;  %v243_v61 = vadd.f32 %v326_v17, %v242_v60 }
 0x112   :  { %v455_v62 = vpop.eup %454  ;;  %466 = vtanh.f32 %v251_v59 }
 0x113   :  { %v457_v63 = vpop.eup %456  ;;  %468 = vtanh.f32 %v243_v61 }
 0x114   :  { %v459_v0 = vpop.eup %458 }
 0x115   :  { %v461_v1 = vpop.eup %460  ;;  %v275_v2 = vpack.c.bf16 %v459_v0, %v455_v62 }
 0x116   :  { %v274_v3 = vpack.c.bf16 %v461_v1, %v457_v63 }
 0x118   :  { %405 = vmatpush3.bf16.xpose.msra.mxu1 %v272_v54 }
 0x119   :  { %406 = vmatprep.subr.bf16.mxu1 %v470_v16 }
 0x11a   :  { %v463_v4 = vpop.eup %462 }
 0x11b   :  { %v465_v5 = vpop.eup %464 }
 0x11c   :  { %v467_v6 = vpop.eup %466 }
 0x11d   :  { %v469_v7 = vpop.eup %468  ;;  %v277_v8 = vpack.c.bf16 %v467_v6, %v463_v4 }
 0x11e   :  { %v276_v9 = vpack.c.bf16 %v469_v7, %v465_v5 }
 0x120   :  { %407 = vmatpush3.bf16.xpose.msra.mxu1 %v273_v52 }
 0x121   :  { %408 = vmatprep.subr.bf16.mxu1 %v470_v16 }
 0x128   :  { %409 = vmatpush3.bf16.xpose.msra.mxu1 %v274_v3 }
 0x129   :  { %410 = vmatprep.subr.bf16.mxu1 %v470_v16 }
 0x130   :  { %411 = vmatpush3.bf16.xpose.msra.mxu1 %v275_v2 }
 0x131   :  { %412 = vmatprep.subr.bf16.mxu1 %v470_v16 }
 0x138   :  { %413 = vmatpush3.bf16.xpose.msra.mxu1 %v276_v9 }
 0x139   :  { %414 = vmatprep.subr.bf16.mxu1 %v470_v16 }
 0x140   :  { %415 = vmatpush3.bf16.xpose.msra.mxu1 %v277_v8 }
 0x147   :  { %417 = vmatmul.mubr.bf16.vlgmr.msra.gmra.mrb[0].mxu1 %v278_v10 }
 0x21a   :  { %v315_v12 = vpop.f32.mrb[0].mxu1 }
 0x21b   :  { %v316_v13 = vadd.f32 %v315_v12, %v280_v11  ;;  %v418_v14 = vpop.f32.mrb[1].mxu1 }
 0x21c   :  { %v318_v15 = vpop.f32.mrb[2].mxu1 }
 0x21d   :  { %321 = vst [vmem:[%s576_s5] sm:$0x1] %v316_v13  ;;  %v419_v17 = vpop.f32.mrb[3].mxu1 }

</bundles_post_ra>
